<compile_context>
chip_gen: v5e
topology: v5e:2x2
jax: 0.10.0
libtpu: 0.0.40
codegen_flags: <defaults>
</compile_context>

<pallas_src>
import functools

import jax
import jax.numpy as jnp
from jax import lax
from jax.experimental import pallas as pl
from jax.experimental.pallas import tpu as pltpu

BN_EPS = 1e-5


def _round_up(x, m):
    return (x + m - 1) // m * m


def _csl_kernel(x_ref, c_ref, w1x_ref, w1c_ref, vec1_ref, w2_ref, b2_ref,
                o_ref, sum_ref, sq_ref, *maybe_cache,
                dim_out, n_valid, tile_n, num_tiles, needs_mask, cache_h,
                matmul_dtype):
    """grid = (phase, row_tile). phase 0: BN stats (+ optional h cache). phase 1: forward."""
    p = pl.program_id(0)
    i = pl.program_id(1)

    h_cache_ref = maybe_cache[0] if cache_h else None

    vec1 = vec1_ref[...]          # (3, H1): rows = [b1 ; gamma ; beta]
    b1 = vec1[0:1, :]
    gamma = vec1[1:2, :]
    beta = vec1[2:3, :]

    def first_matmul():
        # Fused first Linear of all three branches; W1 is split by input rows so x and c
        # stream separately (no HBM concat).  K=dim_in / dim_c both round up in the MXU.
        x = x_ref[...].astype(matmul_dtype)
        c = c_ref[...].astype(matmul_dtype)
        return (jnp.dot(x, w1x_ref[...], preferred_element_type=jnp.float32)
                + jnp.dot(c, w1c_ref[...], preferred_element_type=jnp.float32)
                + b1)

    @pl.when(p == 0)
    def _stats_pass():
        @pl.when(i == 0)
        def _init():
            sum_ref[...] = jnp.zeros_like(sum_ref)
            sq_ref[...] = jnp.zeros_like(sq_ref)

        h = first_matmul()
        if cache_h:
            h_cache_ref[i] = h        # persistent VMEM cache, read back in phase 1

        def accumulate(hm):
            sum_ref[...] += jnp.sum(hm, axis=0, keepdims=True)
            sq_ref[...] += jnp.sum(hm * hm, axis=0, keepdims=True)

        if needs_mask:
            # Only the last tile is ragged -> mask only there.
            @pl.when(i == num_tiles - 1)
            def _masked():
                row = i * tile_n + lax.broadcasted_iota(jnp.int32, (tile_n, 1), 0)
                accumulate(jnp.where(row < n_valid, h, 0.0))

            @pl.when(i != num_tiles - 1)
            def _unmasked():
                accumulate(h)
        else:
            accumulate(h)

        # Fold batch stats into a per-channel affine ONCE, in place:
        #   a  = gamma * rsqrt(var + eps),   b' = beta - mean * a
        @pl.when(i == num_tiles - 1)
        def _finalize():
            inv_n = 1.0 / float(n_valid)
            mean = sum_ref[...] * inv_n
            var = jnp.maximum(sq_ref[...] * inv_n - mean * mean, 0.0)  # biased batch var
            a = gamma * lax.rsqrt(var + BN_EPS)
            sum_ref[...] = a
            sq_ref[...] = beta - mean * a

    @pl.when(p == 1)
    def _compute_pass():
        if cache_h:
            h = h_cache_ref[i]
        else:
            h = first_matmul()
        hn = jnp.maximum(h * sum_ref[...] + sq_ref[...], 0.0)          # BN + ReLU
        z = jnp.dot(hn.astype(matmul_dtype), w2_ref[...],
                    preferred_element_type=jnp.float32) + b2_ref[...]
        y = z[:, :dim_out]
        s = z[:, dim_out:2 * dim_out]
        b = z[:, 2 * dim_out:3 * dim_out]
        # Output block index (p*i) only changes after this block is fully written, so the
        # writeback (which happens on index change / grid end) always carries valid data.
        o_ref[...] = y * jnp.exp(s) + b


def _pack_params(params, dim_in, dim_out, dim_c, matmul_dtype):
    """Pack 18 per-branch arrays into 5 slabs with block-diagonal fused weights."""
    (lw1, lb1, lg, lbt, lw2, lb2,
     sw1, sb1, sg, sbt, sw2, sb2,
     bw1, bb1, bg, bbt, bw2, bb2) = params
    H1 = dim_in + 2 * dim_out
    H2 = 3 * dim_out

    # Fused first Linear, split by input rows (x-rows / c-rows).
    w1x = jnp.zeros((dim_in, H1), jnp.float32).at[:, :dim_in].set(lw1)
    w1c = jnp.zeros((dim_c, H1), jnp.float32)
    w1c = w1c.at[:, dim_in:dim_in + dim_out].set(sw1)
    w1c = w1c.at[:, dim_in + dim_out:].set(bw1)

    vec1 = jnp.concatenate([
        jnp.concatenate([lb1, sb1, bb1], axis=1),
        jnp.concatenate([lg, sg, bg], axis=1),
        jnp.concatenate([lbt, sbt, bbt], axis=1),
    ], axis=0).astype(jnp.float32)                                     # (3, H1)

    w2 = jnp.zeros((H1, H2), jnp.float32)
    w2 = w2.at[:dim_in, :dim_out].set(lw2)
    w2 = w2.at[dim_in:dim_in + dim_out, dim_out:2 * dim_out].set(sw2)
    w2 = w2.at[dim_in + dim_out:, 2 * dim_out:].set(bw2)

    b2 = jnp.concatenate([lb2, sb2, bb2], axis=1).astype(jnp.float32)  # (1, H2)
    return (w1x.astype(matmul_dtype), w1c.astype(matmul_dtype), vec1,
            w2.astype(matmul_dtype), b2)


def concat_squash_linear(x, c, params, *, max_tile_n=4096,
                         max_cache_bytes=12 * 1024 * 1024,
                         use_bf16_matmul=False):
    """x: (N, dim_in), c: (N, dim_c), params: flat tuple of 18 arrays. Returns (N, dim_out) f32."""
    N, dim_in = x.shape
    dim_c = c.shape[1]
    dim_out = params[4].shape[1]          # layer second Linear: (dim_in, dim_out)
    H1 = dim_in + 2 * dim_out
    H2 = 3 * dim_out

    matmul_dtype = jnp.bfloat16 if use_bf16_matmul else jnp.float32
    w1x, w1c, vec1, w2, b2 = _pack_params(params, dim_in, dim_out, dim_c, matmul_dtype)

    # Row tiling: fewest tiles of <= max_tile_n rows, rounded to the sublane granule (8),
    # so padding waste in the last tile is < 8 rows.
    num_tiles_target = pl.cdiv(N, max_tile_n)
    tile_n = _round_up(pl.cdiv(N, num_tiles_target), 8)
    num_tiles = pl.cdiv(N, tile_n)
    needs_mask = (num_tiles * tile_n != N)

    # Cache the fused first-Linear activations across the two passes when they fit in VMEM
    # (lane dim pads to 128): halves input HBM reads and skips the phase-1 first matmul.
    cache_bytes = num_tiles * tile_n * _round_up(H1, 128) * 4
    cache_h = cache_bytes <= max_cache_bytes

    # In bf16 mode also stream the activations as bf16 (halves the dominant HBM traffic).
    x = x.astype(matmul_dtype)
    c = c.astype(matmul_dtype)

    kernel = functools.partial(
        _csl_kernel, dim_out=dim_out, n_valid=N, tile_n=tile_n,
        num_tiles=num_tiles, needs_mask=needs_mask, cache_h=cache_h,
        matmul_dtype=matmul_dtype)

    # x/c row tiles are only needed during phase 0 when h is cached; pinning their block
    # index to 0 during phase 1 avoids re-issuing those DMAs.
    if cache_h:
        row_map = lambda p, i: ((1 - p) * i, 0)
    else:
        row_map = lambda p, i: (i, 0)

    scratch_shapes = [pltpu.VMEM((1, H1), jnp.float32),   # per-channel sum  -> then a
                      pltpu.VMEM((1, H1), jnp.float32)]   # per-channel sumsq -> then b'
    if cache_h:
        scratch_shapes.append(pltpu.VMEM((num_tiles, tile_n, H1), jnp.float32))

    n_stream = num_tiles * tile_n
    first_mm_passes = 1 if cache_h else 2
    flops = (first_mm_passes * 2 * n_stream * (dim_in + dim_c) * H1
             + 2 * n_stream * H1 * H2)
    bytes_accessed = (first_mm_passes * N * (dim_in + dim_c) * x.dtype.itemsize
                      + N * dim_out * 4
                      + ((dim_in + dim_c) * H1 + H1 * H2) * w2.dtype.itemsize
                      + (3 * H1 + H2) * 4)
    cost = pl.CostEstimate(flops=int(flops),
                           transcendentals=int(n_stream * dim_out),
                           bytes_accessed=int(bytes_accessed))

    out = pl.pallas_call(
        kernel,
        out_shape=jax.ShapeDtypeStruct((N, dim_out), jnp.float32),
        grid_spec=pltpu.PrefetchScalarGridSpec(
            num_scalar_prefetch=0,
            grid=(2, num_tiles),                       # (phase, row tile)
            in_specs=[
                pl.BlockSpec((tile_n, dim_in), row_map),           # x row tile
                pl.BlockSpec((tile_n, dim_c), row_map),            # c row tile
                pl.BlockSpec((dim_in, H1), lambda p, i: (0, 0)),   # fused W1 (x rows), resident
                pl.BlockSpec((dim_c, H1), lambda p, i: (0, 0)),    # fused W1 (c rows), resident
                pl.BlockSpec((3, H1), lambda p, i: (0, 0)),        # [b1;gamma;beta]
                pl.BlockSpec((H1, H2), lambda p, i: (0, 0)),       # fused W2, resident
                pl.BlockSpec((1, H2), lambda p, i: (0, 0)),        # fused b2
            ],
            # p*i: constant during phase 0 -> no HBM writeback; each block is written
            # exactly once (phase 1) before its index transition.
            out_specs=pl.BlockSpec((tile_n, dim_out), lambda p, i: (p * i, 0)),
            scratch_shapes=scratch_shapes,
        ),
        compiler_params=pltpu.CompilerParams(
            dimension_semantics=("arbitrary", "arbitrary"),
            vmem_limit_bytes=48 * 1024 * 1024),
        cost_estimate=cost,
    )(x, c, w1x, w1c, vec1, w2, b2)
    return out


# ---- pure-JAX reference (for a correctness sanity check) ----
def _ref_branch(x, w1, b1, gamma, beta, w2, b2):
    h = x @ w1 + b1
    mean = jnp.mean(h, axis=0, keepdims=True)
    var = jnp.mean((h - mean) ** 2, axis=0, keepdims=True)
    h = (h - mean) / jnp.sqrt(var + BN_EPS) * gamma + beta
    h = jnp.maximum(h, 0.0)
    return h @ w2 + b2


def concat_squash_linear_ref(x, c, params):
    (lw1, lb1, lg, lbt, lw2, lb2,
     sw1, sb1, sg, sbt, sw2, sb2,
     bw1, bb1, bg, bbt, bw2, bb2) = params
    y = _ref_branch(x, lw1, lb1, lg, lbt, lw2, lb2)
    s = _ref_branch(c, sw1, sb1, sg, sbt, sw2, sb2)
    b = _ref_branch(c, bw1, bb1, bg, bbt, bw2, bb2)
    return y * jnp.exp(s) + b


def _init_params(key, dim_in, dim_out, dim_c):
    """Deterministic synthetic parameters with the same shapes as the PyTorch module."""
    ks = list(jax.random.split(key, 12))

    def lin(k, fan_in, fan_out):
        kw, kb = jax.random.split(k)
        bound = 1.0 / jnp.sqrt(fan_in)
        w = jax.random.uniform(kw, (fan_in, fan_out), jnp.float32, -bound, bound)
        b = jax.random.uniform(kb, (1, fan_out), jnp.float32, -bound, bound)
        return w, b

    def bn(k, dim):
        kg, kb = jax.random.split(k)
        gamma = 1.0 + 0.1 * jax.random.normal(kg, (1, dim), jnp.float32)
        beta = 0.1 * jax.random.normal(kb, (1, dim), jnp.float32)
        return gamma, beta

    lw1, lb1 = lin(ks[0], dim_in, dim_in)          # self.layer = mlp(dim_in, dim_in, dim_out)
    lg, lbt = bn(ks[1], dim_in)
    lw2, lb2 = lin(ks[2], dim_in, dim_out)
    sw1, sb1 = lin(ks[3], dim_c, dim_out)          # affine.scale = mlp(dim_c, dim_out, dim_out)
    sg, sbt = bn(ks[4], dim_out)
    sw2, sb2 = lin(ks[5], dim_out, dim_out)
    bw1, bb1 = lin(ks[6], dim_c, dim_out)          # affine.bias = mlp(dim_c, dim_out, dim_out)
    bg, bbt = bn(ks[7], dim_out)
    bw2, bb2 = lin(ks[8], dim_out, dim_out)

    return (lw1, lb1, lg, lbt, lw2, lb2,
            sw1, sb1, sg, sbt, sw2, sb2,
            bw1, bb1, bg, bbt, bw2, bb2)


if __name__ == "__main__":
    dim_in, dim_out, dim_c = 16, 32, 8
    key = jax.random.PRNGKey(0)
    kx, kc, kp = jax.random.split(key, 3)
    params = _init_params(kp, dim_in, dim_out, dim_c)

    # Test 1: small batch, single tile, h cached in VMEM.
    N = 8
    x = jax.random.normal(kx, (N, dim_in), jnp.float32)
    c = jax.random.normal(kc, (N, dim_c), jnp.float32)
    out = jax.block_until_ready(concat_squash_linear(x, c, params))
    ref = concat_squash_linear_ref(x, c, params)
    assert out.shape == (N, dim_out)
    assert jnp.allclose(out, ref, atol=5e-4, rtol=5e-4), float(jnp.max(jnp.abs(out - ref)))

    # Test 2: ragged batch -> multi-tile grid + last-tile masking (h cached).
    N2 = 50
    kx2, kc2 = jax.random.split(jax.random.PRNGKey(1))
    x2 = jax.random.normal(kx2, (N2, dim_in), jnp.float32)
    c2 = jax.random.normal(kc2, (N2, dim_c), jnp.float32)
    out2 = jax.block_until_ready(concat_squash_linear(x2, c2, params, max_tile_n=16))
    ref2 = concat_squash_linear_ref(x2, c2, params)
    assert out2.shape == (N2, dim_out)
    assert jnp.allclose(out2, ref2, atol=5e-4, rtol=5e-4), float(jnp.max(jnp.abs(out2 - ref2)))

    # Test 3: same shapes, streaming path forced (no h cache; inputs re-streamed in phase 1).
    out3 = jax.block_until_ready(
        concat_squash_linear(x2, c2, params, max_tile_n=16, max_cache_bytes=0))
    assert jnp.allclose(out3, ref2, atol=5e-4, rtol=5e-4), float(jnp.max(jnp.abs(out3 - ref2)))

    # Test 4: bf16 MXU operands (v6e/v7x fast path); loose norm-relative check.
    N4 = 64
    kx4, kc4 = jax.random.split(jax.random.PRNGKey(2))
    x4 = jax.random.normal(kx4, (N4, dim_in), jnp.float32)
    c4 = jax.random.normal(kc4, (N4, dim_c), jnp.float32)
    out4 = jax.block_until_ready(
        concat_squash_linear(x4, c4, params, use_bf16_matmul=True))
    ref4 = concat_squash_linear_ref(x4, c4, params)
    assert out4.shape == (N4, dim_out)
    assert bool(jnp.all(jnp.isfinite(out4)))
    rel = float(jnp.linalg.norm(out4 - ref4) / jnp.linalg.norm(ref4))
    assert rel < 0.05, rel

    print("KERNEL_OK")
</pallas_src>

<mosaic_0001>
module attributes {stable_mosaic.version = 11 : i64} {
  func.func @_csl_kernel(%arg0: i32, %arg1: i32, %arg2: memref<8x16xf32, #tpu.memory_space<vmem>>, %arg3: memref<8x8xf32, #tpu.memory_space<vmem>>, %arg4: memref<16x80xf32, #tpu.memory_space<vmem>>, %arg5: memref<8x80xf32, #tpu.memory_space<vmem>>, %arg6: memref<3x80xf32, #tpu.memory_space<vmem>>, %arg7: memref<80x96xf32, #tpu.memory_space<vmem>>, %arg8: memref<1x96xf32, #tpu.memory_space<vmem>>, %arg9: memref<8x32xf32, #tpu.memory_space<vmem>>, %arg10: memref<1x80xf32, #tpu.memory_space<vmem>>, %arg11: memref<1x80xf32, #tpu.memory_space<vmem>>, %arg12: memref<1x8x80xf32, #tpu.memory_space<vmem>>) attributes {dimension_semantics = [#tpu.dimension_semantics<arbitrary>, #tpu.dimension_semantics<arbitrary>], iteration_bounds = array<i64: 2, 1>, scalar_prefetch = 0 : i64, scratch_operands = 3 : i64, tpu.core_type = #tpu.core_type<tc>, window_params = [{transform_indices = @transform_0, window_bounds = array<i64: 8, 16>}, {transform_indices = @transform_1, window_bounds = array<i64: 8, 8>}, {pipeline_mode = #tpu.pipeline_mode<synchronous>, transform_indices = @transform_2, window_bounds = array<i64: 16, 80>}, {pipeline_mode = #tpu.pipeline_mode<synchronous>, transform_indices = @transform_3, window_bounds = array<i64: 8, 80>}, {pipeline_mode = #tpu.pipeline_mode<synchronous>, transform_indices = @transform_4, window_bounds = array<i64: 3, 80>}, {pipeline_mode = #tpu.pipeline_mode<synchronous>, transform_indices = @transform_5, window_bounds = array<i64: 80, 96>}, {pipeline_mode = #tpu.pipeline_mode<synchronous>, transform_indices = @transform_6, window_bounds = array<i64: 1, 96>}, {transform_indices = @transform_7, window_bounds = array<i64: 8, 32>}]} {
    %c0 = arith.constant 0 : index
    %c0_0 = arith.constant 0 : index
    %0 = vector.load %arg6[%c0, %c0_0] : memref<3x80xf32, #tpu.memory_space<vmem>>, vector<3x80xf32>
    %1 = vector.extract_strided_slice %0 {offsets = [0, 0], sizes = [1, 80], strides = [1, 1]} : vector<3x80xf32> to vector<1x80xf32>
    %2 = vector.extract_strided_slice %0 {offsets = [1, 0], sizes = [1, 80], strides = [1, 1]} : vector<3x80xf32> to vector<1x80xf32>
    %3 = vector.extract_strided_slice %0 {offsets = [2, 0], sizes = [1, 80], strides = [1, 1]} : vector<3x80xf32> to vector<1x80xf32>
    %c0_i32 = arith.constant 0 : i32
    %4 = arith.cmpi eq, %arg0, %c0_i32 : i32
    %5 = arith.extui %4 : i1 to i32
    %c0_i32_1 = arith.constant 0 : i32
    %6 = arith.cmpi ne, %5, %c0_i32_1 : i32
    scf.if %6 {
      %c0_i32_3 = arith.constant 0 : i32
      %10 = arith.cmpi eq, %arg1, %c0_i32_3 : i32
      %11 = arith.extui %10 : i1 to i32
      %c0_i32_4 = arith.constant 0 : i32
      %12 = arith.cmpi ne, %11, %c0_i32_4 : i32
      scf.if %12 {
        %cst_28 = arith.constant 0.000000e+00 : f32
        %40 = vector.broadcast %cst_28 : f32 to vector<1x80xf32>
        %c0_29 = arith.constant 0 : index
        %c0_30 = arith.constant 0 : index
        %41 = vector.load %arg10[%c0_29, %c0_30] : memref<1x80xf32, #tpu.memory_space<vmem>>, vector<1x80xf32>
        tpu.vector_store %arg10[%c0_29, %c0_30], %40 {strides = array<i32>} : memref<1x80xf32, #tpu.memory_space<vmem>>, vector<1x80xf32>,
        %cst_31 = arith.constant 0.000000e+00 : f32
        %42 = vector.broadcast %cst_31 : f32 to vector<1x80xf32>
        %c0_32 = arith.constant 0 : index
        %c0_33 = arith.constant 0 : index
        %43 = vector.load %arg11[%c0_32, %c0_33] : memref<1x80xf32, #tpu.memory_space<vmem>>, vector<1x80xf32>
        tpu.vector_store %arg11[%c0_32, %c0_33], %42 {strides = array<i32>} : memref<1x80xf32, #tpu.memory_space<vmem>>, vector<1x80xf32>,
      } else {
      }
      %c0_5 = arith.constant 0 : index
      %c0_6 = arith.constant 0 : index
      %13 = vector.load %arg2[%c0_5, %c0_6] : memref<8x16xf32, #tpu.memory_space<vmem>>, vector<8x16xf32>
      %c0_7 = arith.constant 0 : index
      %c0_8 = arith.constant 0 : index
      %14 = vector.load %arg3[%c0_7, %c0_8] : memref<8x8xf32, #tpu.memory_space<vmem>>, vector<8x8xf32>
      %c0_9 = arith.constant 0 : index
      %c0_10 = arith.constant 0 : index
      %15 = vector.load %arg4[%c0_9, %c0_10] : memref<16x80xf32, #tpu.memory_space<vmem>>, vector<16x80xf32>
      %cst = arith.constant dense<0.000000e+00> : vector<8x80xf32>
      %16 = tpu.matmul %13, %15, %cst {dimension_numbers = #tpu.dot_dimension_numbers<[1], [0], [0], [1], [0, 0, 1, 1], [], []>} : vector<8x16xf32>, vector<16x80xf32>, vector<8x80xf32> -> vector<8x80xf32>
      %c0_11 = arith.constant 0 : index
      %c0_12 = arith.constant 0 : index
      %17 = vector.load %arg5[%c0_11, %c0_12] : memref<8x80xf32, #tpu.memory_space<vmem>>, vector<8x80xf32>
      %cst_13 = arith.constant dense<0.000000e+00> : vector<8x80xf32>
      %18 = tpu.matmul %14, %17, %cst_13 {dimension_numbers = #tpu.dot_dimension_numbers<[1], [0], [0], [1], [0, 0, 1, 1], [], []>} : vector<8x8xf32>, vector<8x80xf32>, vector<8x80xf32> -> vector<8x80xf32>
      %19 = arith.addf %16, %18 : vector<8x80xf32>
      %20 = vector.broadcast %1 : vector<1x80xf32> to vector<8x80xf32>
      %21 = arith.addf %19, %20 : vector<8x80xf32>
      %22 = arith.index_cast %arg1 : i32 to index
      %c0_14 = arith.constant 0 : index
      %c0_15 = arith.constant 0 : index
      %23 = vector.load %arg12[%22, %c0_14, %c0_15] : memref<1x8x80xf32, #tpu.memory_space<vmem>>, vector<1x8x80xf32>
      %24 = vector.shape_cast %23 : vector<1x8x80xf32> to vector<8x80xf32>
      %25 = vector.shape_cast %21 : vector<8x80xf32> to vector<1x8x80xf32>
      tpu.vector_store %arg12[%22, %c0_14, %c0_15], %25 {strides = array<i32>} : memref<1x8x80xf32, #tpu.memory_space<vmem>>, vector<1x8x80xf32>,
      %c0_16 = arith.constant 0 : index
      %c0_17 = arith.constant 0 : index
      %26 = vector.load %arg10[%c0_16, %c0_17] : memref<1x80xf32, #tpu.memory_space<vmem>>, vector<1x80xf32>
      %cst_18 = arith.constant dense<0.000000e+00> : vector<80xf32>
      %27 = vector.multi_reduction <add>, %21, %cst_18 [0] : vector<8x80xf32> to vector<80xf32>
      %28 = vector.shape_cast %27 : vector<80xf32> to vector<1x80xf32>
      %29 = arith.addf %26, %28 : vector<1x80xf32>
      %c0_19 = arith.constant 0 : index
      %c0_20 = arith.constant 0 : index
      %30 = vector.load %arg10[%c0_19, %c0_20] : memref<1x80xf32, #tpu.memory_space<vmem>>, vector<1x80xf32>
      tpu.vector_store %arg10[%c0_19, %c0_20], %29 {strides = array<i32>} : memref<1x80xf32, #tpu.memory_space<vmem>>, vector<1x80xf32>,
      %c0_21 = arith.constant 0 : index
      %c0_22 = arith.constant 0 : index
      %31 = vector.load %arg11[%c0_21, %c0_22] : memref<1x80xf32, #tpu.memory_space<vmem>>, vector<1x80xf32>
      %32 = arith.mulf %21, %21 : vector<8x80xf32>
      %cst_23 = arith.constant dense<0.000000e+00> : vector<80xf32>
      %33 = vector.multi_reduction <add>, %32, %cst_23 [0] : vector<8x80xf32> to vector<80xf32>
      %34 = vector.shape_cast %33 : vector<80xf32> to vector<1x80xf32>
      %35 = arith.addf %31, %34 : vector<1x80xf32>
      %c0_24 = arith.constant 0 : index
      %c0_25 = arith.constant 0 : index
      %36 = vector.load %arg11[%c0_24, %c0_25] : memref<1x80xf32, #tpu.memory_space<vmem>>, vector<1x80xf32>
      tpu.vector_store %arg11[%c0_24, %c0_25], %35 {strides = array<i32>} : memref<1x80xf32, #tpu.memory_space<vmem>>, vector<1x80xf32>,
      %c0_i32_26 = arith.constant 0 : i32
      %37 = arith.cmpi eq, %arg1, %c0_i32_26 : i32
      %38 = arith.extui %37 : i1 to i32
      %c0_i32_27 = arith.constant 0 : i32
      %39 = arith.cmpi ne, %38, %c0_i32_27 : i32
      scf.if %39 {
        %c0_28 = arith.constant 0 : index
        %c0_29 = arith.constant 0 : index
        %40 = vector.load %arg10[%c0_28, %c0_29] : memref<1x80xf32, #tpu.memory_space<vmem>>, vector<1x80xf32>
        %cst_30 = arith.constant 1.250000e-01 : f32
        %41 = vector.broadcast %cst_30 : f32 to vector<1x80xf32>
        %42 = arith.mulf %40, %41 : vector<1x80xf32>
        %c0_31 = arith.constant 0 : index
        %c0_32 = arith.constant 0 : index
        %43 = vector.load %arg11[%c0_31, %c0_32] : memref<1x80xf32, #tpu.memory_space<vmem>>, vector<1x80xf32>
        %cst_33 = arith.constant 1.250000e-01 : f32
        %44 = vector.broadcast %cst_33 : f32 to vector<1x80xf32>
        %45 = arith.mulf %43, %44 : vector<1x80xf32>
        %46 = arith.mulf %42, %42 : vector<1x80xf32>
        %47 = arith.subf %45, %46 : vector<1x80xf32>
        %cst_34 = arith.constant 0.000000e+00 : f32
        %48 = vector.broadcast %cst_34 : f32 to vector<1x80xf32>
        %49 = arith.maximumf %47, %48 : vector<1x80xf32>
        %cst_35 = arith.constant 9.99999974E-6 : f32
        %50 = vector.broadcast %cst_35 : f32 to vector<1x80xf32>
        %51 = arith.addf %49, %50 : vector<1x80xf32>
        %52 = math.rsqrt %51 : vector<1x80xf32>
        %53 = arith.mulf %2, %52 : vector<1x80xf32>
        %c0_36 = arith.constant 0 : index
        %c0_37 = arith.constant 0 : index
        %54 = vector.load %arg10[%c0_36, %c0_37] : memref<1x80xf32, #tpu.memory_space<vmem>>, vector<1x80xf32>
        tpu.vector_store %arg10[%c0_36, %c0_37], %53 {strides = array<i32>} : memref<1x80xf32, #tpu.memory_space<vmem>>, vector<1x80xf32>,
        %55 = arith.mulf %42, %53 : vector<1x80xf32>
        %56 = arith.subf %3, %55 : vector<1x80xf32>
        %c0_38 = arith.constant 0 : index
        %c0_39 = arith.constant 0 : index
        %57 = vector.load %arg11[%c0_38, %c0_39] : memref<1x80xf32, #tpu.memory_space<vmem>>, vector<1x80xf32>
        tpu.vector_store %arg11[%c0_38, %c0_39], %56 {strides = array<i32>} : memref<1x80xf32, #tpu.memory_space<vmem>>, vector<1x80xf32>,
      } else {
      }
    } else {
    }
    %c1_i32 = arith.constant 1 : i32
    %7 = arith.cmpi eq, %arg0, %c1_i32 : i32
    %8 = arith.extui %7 : i1 to i32
    %c0_i32_2 = arith.constant 0 : i32
    %9 = arith.cmpi ne, %8, %c0_i32_2 : i32
    scf.if %9 {
      %10 = arith.index_cast %arg1 : i32 to index
      %c0_3 = arith.constant 0 : index
      %c0_4 = arith.constant 0 : index
      %11 = vector.load %arg12[%10, %c0_3, %c0_4] : memref<1x8x80xf32, #tpu.memory_space<vmem>>, vector<1x8x80xf32>
      %12 = vector.shape_cast %11 : vector<1x8x80xf32> to vector<8x80xf32>
      %c0_5 = arith.constant 0 : index
      %c0_6 = arith.constant 0 : index
      %13 = vector.load %arg10[%c0_5, %c0_6] : memref<1x80xf32, #tpu.memory_space<vmem>>, vector<1x80xf32>
      %14 = vector.broadcast %13 : vector<1x80xf32> to vector<8x80xf32>
      %15 = arith.mulf %12, %14 : vector<8x80xf32>
      %c0_7 = arith.constant 0 : index
      %c0_8 = arith.constant 0 : index
      %16 = vector.load %arg11[%c0_7, %c0_8] : memref<1x80xf32, #tpu.memory_space<vmem>>, vector<1x80xf32>
      %17 = vector.broadcast %16 : vector<1x80xf32> to vector<8x80xf32>
      %18 = arith.addf %15, %17 : vector<8x80xf32>
      %cst = arith.constant 0.000000e+00 : f32
      %19 = vector.broadcast %cst : f32 to vector<8x80xf32>
      %20 = arith.maximumf %18, %19 : vector<8x80xf32>
      %c0_9 = arith.constant 0 : index
      %c0_10 = arith.constant 0 : index
      %21 = vector.load %arg7[%c0_9, %c0_10] : memref<80x96xf32, #tpu.memory_space<vmem>>, vector<80x96xf32>
      %cst_11 = arith.constant dense<0.000000e+00> : vector<8x96xf32>
      %22 = tpu.matmul %20, %21, %cst_11 {dimension_numbers = #tpu.dot_dimension_numbers<[1], [0], [0], [1], [0, 0, 1, 1], [], []>} : vector<8x80xf32>, vector<80x96xf32>, vector<8x96xf32> -> vector<8x96xf32>
      %c0_12 = arith.constant 0 : index
      %c0_13 = arith.constant 0 : index
      %23 = vector.load %arg8[%c0_12, %c0_13] : memref<1x96xf32, #tpu.memory_space<vmem>>, vector<1x96xf32>
      %24 = vector.broadcast %23 : vector<1x96xf32> to vector<8x96xf32>
      %25 = arith.addf %22, %24 : vector<8x96xf32>
      %26 = vector.extract_strided_slice %25 {offsets = [0, 0], sizes = [8, 32], strides = [1, 1]} : vector<8x96xf32> to vector<8x32xf32>
      %27 = vector.extract_strided_slice %25 {offsets = [0, 32], sizes = [8, 32], strides = [1, 1]} : vector<8x96xf32> to vector<8x32xf32>
      %28 = vector.extract_strided_slice %25 {offsets = [0, 64], sizes = [8, 32], strides = [1, 1]} : vector<8x96xf32> to vector<8x32xf32>
      %29 = math.exp %27 : vector<8x32xf32>
      %30 = arith.mulf %26, %29 : vector<8x32xf32>
      %31 = arith.addf %30, %28 : vector<8x32xf32>
      %c0_14 = arith.constant 0 : index
      %c0_15 = arith.constant 0 : index
      %32 = vector.load %arg9[%c0_14, %c0_15] : memref<8x32xf32, #tpu.memory_space<vmem>>, vector<8x32xf32>
      tpu.vector_store %arg9[%c0_14, %c0_15], %31 {strides = array<i32>} : memref<8x32xf32, #tpu.memory_space<vmem>>, vector<8x32xf32>,
    } else {
    }
    return
  }
  func.func @transform_0(%arg0: i32, %arg1: i32) -> (i32, i32) {
    %c1_i32 = arith.constant 1 : i32
    %0 = arith.subi %c1_i32, %arg0 : i32
    %1 = arith.muli %0, %arg1 : i32
    %c0_i32 = arith.constant 0 : i32
    %c0_i32_0 = arith.constant 0 : i32
    return %1, %c0_i32 : i32, i32
  }
  func.func @transform_1(%arg0: i32, %arg1: i32) -> (i32, i32) {
    %c1_i32 = arith.constant 1 : i32
    %0 = arith.subi %c1_i32, %arg0 : i32
    %1 = arith.muli %0, %arg1 : i32
    %c0_i32 = arith.constant 0 : i32
    %c0_i32_0 = arith.constant 0 : i32
    return %1, %c0_i32 : i32, i32
  }
  func.func @transform_2(%arg0: i32, %arg1: i32) -> (i32, i32) {
    %c0_i32 = arith.constant 0 : i32
    %c0_i32_0 = arith.constant 0 : i32
    %c0_i32_1 = arith.constant 0 : i32
    return %c0_i32, %c0_i32_0 : i32, i32
  }
  func.func @transform_3(%arg0: i32, %arg1: i32) -> (i32, i32) {
    %c0_i32 = arith.constant 0 : i32
    %c0_i32_0 = arith.constant 0 : i32
    %c0_i32_1 = arith.constant 0 : i32
    return %c0_i32, %c0_i32_0 : i32, i32
  }
  func.func @transform_4(%arg0: i32, %arg1: i32) -> (i32, i32) {
    %c0_i32 = arith.constant 0 : i32
    %c0_i32_0 = arith.constant 0 : i32
    %c0_i32_1 = arith.constant 0 : i32
    return %c0_i32, %c0_i32_0 : i32, i32
  }
  func.func @transform_5(%arg0: i32, %arg1: i32) -> (i32, i32) {
    %c0_i32 = arith.constant 0 : i32
    %c0_i32_0 = arith.constant 0 : i32
    %c0_i32_1 = arith.constant 0 : i32
    return %c0_i32, %c0_i32_0 : i32, i32
  }
  func.func @transform_6(%arg0: i32, %arg1: i32) -> (i32, i32) {
    %c0_i32 = arith.constant 0 : i32
    %c0_i32_0 = arith.constant 0 : i32
    %c0_i32_1 = arith.constant 0 : i32
    return %c0_i32, %c0_i32_0 : i32, i32
  }
  func.func @transform_7(%arg0: i32, %arg1: i32) -> (i32, i32) {
    %0 = arith.muli %arg0, %arg1 : i32
    %c0_i32 = arith.constant 0 : i32
    %c0_i32_0 = arith.constant 0 : i32
    return %0, %c0_i32 : i32, i32
  }
}

</mosaic_0001>

<bundles_post_ra>
// kernel: tpu_custom_call.1
= control target key start
LH: loop header
LB: loop body
LE: loop exit
PB: predicated region body
PF: predicated region fallthrough
CT: control target
= control target key end

     0   :  { %12 = vsyncpa [#allocation6], 0  ;;  %s1356_s0 = inlined_call_operand.hbm [shape: f32[8,16], index: 0, kind: input, shape index: {}]   ;;  %s1357_s1 = inlined_call_operand.hbm [shape: f32[8,8], index: 1, kind: input, shape index: {}]   ;;  %s1358_s2 = inlined_call_operand.hbm [shape: f32[16,80], index: 2, kind: input, shape index: {}]   ;;  %s1359_s3 = inlined_call_operand.hbm [shape: f32[8,80], index: 3, kind: input, shape index: {}]   ;;  %s1360_s4 = inlined_call_operand.hbm [shape: f32[3,80], index: 4, kind: input, shape index: {}]   ;;  %s1361_s5 = inlined_call_operand.hbm [shape: f32[80,96], index: 5, kind: input, shape index: {}]   ;;  %s1362_s6 = inlined_call_operand.vmem [shape: f32[1,96], index: 6, kind: input, shape index: {}]   ;;  %s1363_s7 = inlined_call_operand.hbm [shape: f32[8,32], index: 7, kind: output, shape index: {}]  }
   0x1   :  { %14 = vsyncpa [#allocation6 + $0x1], 0 }
   0x2   :  { %15 = vsyncpa [#allocation9], 0 }
   0x3   :  { %17 = vsyncpa [#allocation9 + $0x1], 0 }
   0x4   :  { %18 = vsyncpa [#allocation12], 0 }
   0x5   :  { %19 = vsyncpa [#allocation15], 0 }
   0x6   :  { %20 = vsyncpa [#allocation7], 0 }
   0x7   :  { %22 = vsyncpa [#allocation7 + $0x1], 0  ;;  %s1235_s24 = smov 0   ;;  %s1237_s25 = smov 0  }
   0x8   :  { %s1239_s26 = smov 0  }
   0x9 LB: > { %s1251_s27 = sadd.s32 4294967295, %s1181_s26   ;;  %s791_s28 = sadd.s32 4294967294, %s1181_s26   ;;  %s1181_s26 = sphi %s1239_s26, %s28_s26   ;;  %s1177_s25 = sphi %s1237_s25, %s1367_s25   ;;  %s1173_s24 = sphi %s1235_s24, %s1366_s24  }
   0xa   : > { %s40_s29 = sadd.s32 1, %s1177_s25  ;;  %p792_p0 = scmp.ge.s32.totalorder %s1181_s26, 1 }
   0xb   : > { %p42_p1 = scmp.ge.s32.totalorder %s40_s29, 2  ;;  %p238_p2 = scmp.lt.s32.totalorder %s1181_s26, 3 }
   0xc   : > { %p868_p3 = scmp.eq.s32.totalorder %s1251_s27, 0  ;;  %s249_s10 = sshll.u32 %s1358_s2, 4  ;;  %s250_s10 = int_to_ptr.hbm [resolvable:$true] %s249_s10 }
   0xd   : > { %s1369_s29 = smov (%p42_p1, %s40_s29), 0  ;;  %p1260_p4 = pnand %p792_p0, %p238_p2 }
   0xe   : > { %s1183_s11 = smov [#allocation10]   ;;  %p797_p7 = scmp.ge.s32.totalorder %s1181_s26, 2 }
   0xf   : > { %p844_p5 = pneg %p1260_p4  ;;  %s251_s12 = sshll.u32 %s1183_s11, 4  ;;  %s252_s12 = int_to_ptr.vmem [resolvable:$true] %s251_s12 }
  0x10   : > { %s264_s16 = sshll.u32 %s1359_s3, 4  ;;  %s1184_s17 = smov 128   ;;  %s265_s16 = int_to_ptr.hbm [resolvable:$true] %s264_s16 }
  0x11   : > { %p1271_p6 = pnand %p868_p3, %p844_p5  ;;  %s1185_s18 = smov 8  }
  0x12   : > { %s1186_s19 = smov [#allocation11]   ;;  %s276_s23 = sshll.u32 %s1360_s4, 4  ;;  %s277_s23 = int_to_ptr.hbm [resolvable:$true] %s276_s23 }
  0x13   : > { %847 = dma.hbm_to_vmem [thread:$0]  (!%p1271_p6), %s250_s10, 256, %s252_s12, [#allocation9], %s1184_s17, %s1184_s17, %s1185_s18  }
  0x14   : > { %s266_s20 = sshll.u32 %s1186_s19, 4  ;;  %s287_s11 = sshll.u32 %s1361_s5, 4  ;;  %s267_s20 = int_to_ptr.vmem [resolvable:$true] %s266_s20  ;;  %s288_s11 = int_to_ptr.hbm [resolvable:$true] %s287_s11 }
  0x15   : > { %850 = dma.hbm_to_vmem [thread:$0]  (!%p1271_p6), %s265_s16, 128, %s267_s20, [#allocation12]  }
  0x16   : > { %s1187_s14 = smov [#allocation13]   ;;  %s1188_s12 = smov [#allocation14]  }
  0x17   : > { %s278_s10 = sshll.u32 %s1187_s14, 4  ;;  %s289_s15 = sshll.u32 %s1188_s12, 4  ;;  %s279_s10 = int_to_ptr.vmem [resolvable:$true] %s278_s10  ;;  %s290_s15 = int_to_ptr.vmem [resolvable:$true] %s289_s15 }
  0x18   : > { %853 = dma.hbm_to_vmem [thread:$0]  (!%p1271_p6), %s277_s23, 64, %s279_s10, [#allocation12]  }
  0x19   : > { %p872_p8 = scmp.lt.s32.totalorder %s1181_s26, 2  ;;  %p873_p9 = scmp.eq.s32.totalorder %s1181_s26, 0 }
  0x1a   : > { %856 = dma.hbm_to_vmem [thread:$0]  (!%p1271_p6), %s288_s11, 1280, %s290_s15, [#allocation15], %s1184_s17, %s1184_s17, %s1185_s18  }
  0x1b   : > { %s318_s20 = sshll.u32 %s1356_s0, 4  ;;  %s1189_s21 = smov [#allocation5]   ;;  %s319_s20 = int_to_ptr.hbm [resolvable:$true] %s318_s20 }
  0x1c   : > { %s320_s22 = sshll.u32 %s1189_s21, 4  ;;  %p858_p10 = pnand %p873_p9, %p872_p8  ;;  %s321_s22 = int_to_ptr.vmem [resolvable:$true] %s320_s22 }
  0x1d   : > { %s327_s8 = sand.u32 1, %s1181_s26   ;;  %s339_s23 = sshll.u32 %s1357_s1, 4  ;;  %s340_s23 = int_to_ptr.hbm [resolvable:$true] %s339_s23 }
  0x1e   : > { %860 = dma.hbm_to_vmem [thread:$0]  (!%p858_p10), %s319_s20, 128, %s321_s22, [#allocation6]  }
  0x1f   : > { %s1190_s10 = smov [#allocation8]   ;;  %s328_s13 = scalar_lea.sflag [#allocation9], %s327_s8 }
  0x20   : > { %s341_s12 = sshll.u32 %s1190_s10, 4  ;;  %350 = sbr.rel (%p1260_p4) target bundleno = 553 (0x229), region = 48  ;;  %s342_s12 = int_to_ptr.vmem [resolvable:$true] %s341_s12 }
  0x21   : > { %863 = dma.hbm_to_vmem [thread:$0]  (!%p858_p10), %s340_s23, 128, %s342_s12, %s328_s13  }
  0x25   : > { %1148 = dma.done.wait (%p868_p3), [#allocation6], 128  }
  0x26   : > { %1150 = vsyncadd (%p868_p3), [#allocation6], 4294967168  ;;  %s362_s17 = sand.u32 1, %s1251_s27  }
  0x27   : > { %s363_s18 = scalar_lea.sflag [#allocation9], %s362_s17 }
  0x28   : > { %1152 = dma.done.wait (%p868_p3), %s363_s18, 128  }
  0x29   : > { %1154 = vsyncadd (%p868_p3), %s363_s18, 4294967168 }
  0x2a   : > { %1156 = dma.done.wait (%p868_p3), [#allocation9], 256  }
  0x2b   : > { %1158 = vsyncadd (%p868_p3), [#allocation9], 4294967040 }
  0x2c   : > { %1160 = dma.done.wait (%p868_p3), [#allocation12], 192  }
  0x2d   : > { %1162 = vsyncadd (%p868_p3), [#allocation12], 4294967104 }
  0x2e   : > { %1164 = dma.done.wait (%p868_p3), [#allocation15], 1280  }
  0x2f   : > { %1166 = vsyncadd (%p868_p3), [#allocation15], 4294966016  ;;  %v1325_v0 = vld [vmem:[#allocation13] sm:$0x7]  ;;  %p807_p11 = scmp.ne.s32.totalorder %s1173_s24, 0 }
  0x31   : > { %432 = sbr.rel (%p807_p11) target bundleno = 259 (0x103), region = 76 }
  0x36   : > { %v443_v1 = vld [vmem:[#allocation10 + $0x8] sm:$0xff]  ;;  %v444_v2 = vld [vmem:[#allocation11] sm:$0xff]  ;;  %v442_v3 = vld [vmem:[#allocation10] sm:$0xff]  ;;  %vm445_vm0 = vcmask 64512   ;;  %vm469_vm1 = vcmask 130048   ;;  %vm437_vm2 = vcmask 647168  }
  0x37   : > { %487 = vmatpush.msra.mxu1 %v443_v1  ;;  %464 = vmatpush.msra.mxu0 %v444_v2  ;;  %v441_v4 = vld [vmem:[#allocation8] sm:$0xff]  ;;  %v440_v5 = vld [vmem:[#allocation5] sm:$0xff]  ;;  %v1191_v6 = vmov 0.0   ;;  %v493_v8 = vperm.slane %v1325_v0, 0  ;;  %vm497_vm3 = vcmask 654336   ;;  %vm546_vm7 = vcmask 648193  }
  0x38   : > { %808 = vmatmul.msk.f32.vlgmr.msra.gmra.mxu0 %vm445_vm0, %v441_v4  ;;  %438 = vst.msk [vmem:[#allocation2] sm:$0x1] %vm437_vm2, %v1191_v6  ;;  %vm558_vm8 = vcmask 649218  }
  0x39   : > { %488 = vmatpush.msra.mxu1 %v442_v3  ;;  %439 = vst.msk [vmem:[#allocation3] sm:$0x1] %vm437_vm2, %v1191_v6 }
  0x3a   : > { %809 = vmatmul.msk.f32.vlgmr.msra.gmra.mxu1 %vm469_vm1, %v440_v5 }
  0x3f   : > { %v499_v24 = vld [vmem:[#allocation2] sm:$0x1] }
  0x40   : > { %v510_v27 = vld [vmem:[#allocation3] sm:$0x1] }
  0xb5   : > { %v466_v7 = vpop.f32.mrf.mxu0 }
  0xb7   : > { %v490_v9 = vpop.f32.mrf.mxu1 }
  0xb8   : > { %v491_v10 = vadd.f32 %v490_v9, %v466_v7 }
  0xba   : > { %v494_v11 = vadd.f32 %v493_v8, %v491_v10 }
  0xbc   : > { %498 = vst.msk [vmem:[#allocation4] sm:$0xff] %vm497_vm3, %v494_v11  ;;  %v500_v12 = vsel %vm497_vm3, %v494_v11, 0.0  ;;  %v511_v13 = vmul.f32 %v494_v11, %v494_v11 }
  0xbd   : > { %v501_v14 = vrot.slane %v500_v12, 4 }
  0xbe   : > { %v512_v15 = vsel %vm497_vm3, %v511_v13, 0.0 }
  0xbf   : > { %v502_v16 = vadd.f32 %v501_v14, %v500_v12  ;;  %v513_v17 = vrot.slane %v512_v15, 4 }
  0xc1   : > { %v503_v18 = vrot.slane %v502_v16, 2  ;;  %v514_v19 = vadd.f32 %v513_v17, %v512_v15 }
  0xc3   : > { %v504_v20 = vadd.f32 %v503_v18, %v502_v16  ;;  %v515_v21 = vrot.slane %v514_v19, 2 }
  0xc5   : > { %v505_v22 = vrot.slane %v504_v20, 1  ;;  %v516_v23 = vadd.f32 %v515_v21, %v514_v19 }
  0xc7   : > { %v506_v25 = vadd.f32 %v505_v22, %v504_v20  ;;  %v517_v26 = vrot.slane %v516_v23, 1 }
  0xc9   : > { %v507_v28 = vadd.f32 %v506_v25, %v499_v24  ;;  %v518_v29 = vadd.f32 %v517_v26, %v516_v23 }
  0xcb   : > { %509 = vst.msk [vmem:[#allocation2] sm:$0x1] %vm437_vm2, %v507_v28  ;;  %v519_v30 = vadd.f32 %v518_v29, %v510_v27 }
  0xcd   : > { %520 = vst.msk [vmem:[#allocation3] sm:$0x1] %vm437_vm2, %v519_v30 }
  0xd2   : > { %v524_v31 = vld [vmem:[#allocation2] sm:$0x1] }
  0xd3   : > { %v525_v32 = vmul.f32 0.125, %v524_v31 }
  0xd4   : > { %v526_v33 = vld [vmem:[#allocation3] sm:$0x1] }
  0xd5   : > { %v527_v34 = vmul.f32 0.125, %v526_v33  ;;  %v528_v35 = vmul.f32 %v525_v32, %v525_v32 }
  0xd7   : > { %v529_v36 = vsub.f32 %v527_v34, %v528_v35 }
  0xd9   : > { %v530_v37 = vmax.f32 %v529_v36, 0.0 }
  0xdb   : > { %v531_v38 = vadd.f32 1e-05, %v530_v37 }
  0xdd   : > { %920 = vrsqrt.f32 %v531_v38  ;;  %vm538_vm5 = vweird.f32 %v531_v38 }
  0xe3   : > { %v921_v39 = vpop.eup %920 }
  0xe4   : > { %v533_v40 = vmul.f32 %v921_v39, %v531_v38  ;;  %vm539_vm4 = vweird.f32 %v921_v39 }
  0xe5   : > { %vm540_vm6 = vmor %vm538_vm5, %vm539_vm4 }
  0xe6   : > { %v534_v41 = vmul.f32 %v921_v39, %v533_v40 }
  0xe8   : > { %v535_v42 = vmul.f32 0.5, %v534_v41 }
  0xea   : > { %v536_v43 = vsub.f32 1.5, %v535_v42 }
  0xec   : > { %v537_v44 = vmul.f32 %v921_v39, %v536_v43 }
  0xee   : > { %v541_v45 = vsel %vm540_vm6, %v921_v39, %v537_v44 }
  0xef   : > { %v543_v46 = vperm.slane %v541_v45, 0 }
  0xf1   : > { %v545_v47 = vmul.f32 %v543_v46, %v1325_v0 }
  0xf3   : > { %547 = vst.msk [vmem:[#allocation2 - $0x1] sm:$0x2] %vm546_vm7, %v545_v47 }
  0xf4   : > { %549 = vst [vmem:[#allocation1] sm:$0xff] %v545_v47 }
  0xfb   : > { %v551_v48 = vld [vmem:[#allocation1 + $0x1] ss:$9 sm:$0xff] }
  0xfc   : > { %v553_v49 = vmul.f32 %v551_v48, %v525_v32 }
  0xfe   : > { %v555_v50 = vperm.slane %v553_v49, 0 }
 0x100   : > { %v557_v51 = vsub.f32 %v1325_v0, %v555_v50 }
 0x102   : > { %559 = vst.msk [vmem:[#allocation3 - $0x2] sm:$0x4] %vm558_vm8, %v557_v51 }
 0x103 PF: > { %p810_p12 = scmp.ne.s32.totalorder %s1173_s24, 1 }
 0x104   : > { %s1192_s11 = smov (!%p810_p12), 96   ;;  %s1193_s15 = smov (!%p810_p12), 64  }
 0x105   : > { %563 = sbr.rel (%p810_p12) target bundleno = 549 (0x225), region = 88 }
 0x10a   : > { %v587_v52 = vld [vmem:[#allocation14 + $0x48] sm:$0xff]  ;;  %v586_v53 = vld [vmem:[#allocation14 + $0x40] sm:$0xff]  ;;  %v585_v54 = vld [vmem:[#allocation14 + $0x38] sm:$0xff]  ;;  %vm592_vm9 = vcmask 654336   ;;  %vm628_vm10 = vcmask 261120  }
 0x10b   : > { %602 = vmatpush.msra.mxu0 %v587_v52  ;;  %v584_v55 = vld [vmem:[#allocation14 + $0x30] sm:$0xff]  ;;  %v922_v56 = vld [vmem:[#allocation2] ss:$0 sm:$0xff]  ;;  %v566_v57 = vld [vmem:[#allocation4] sm:$0xff] }
 0x10c   : > { %v583_v58 = vld [vmem:[#allocation14 + $0x28] sm:$0xff]  ;;  %v582_v59 = vld [vmem:[#allocation14 + $0x20] sm:$0xff]  ;;  %v571_v60 = vmul.f32 %v922_v56, %v566_v57  ;;  %v923_v61 = vld [vmem:[#allocation3] ss:$0 sm:$0xff] }
 0x10d   : > { %603 = vmatpush.msra.mxu0 %v586_v53  ;;  %v581_v62 = vld [vmem:[#allocation14 + $0x18] sm:$0xff]  ;;  %v580_v63 = vld [vmem:[#allocation14 + $0x10] sm:$0xff]  ;;  %v579_v1 = vld [vmem:[#allocation14 + $0x8] sm:$0xff] }
 0x10e   : > { %v576_v0 = vadd.f32 %v923_v61, %v571_v60  ;;  %v578_v2 = vld [vmem:[#allocation14] sm:$0xff]  ;;  %v924_v4 = vld [vmem:[%s1362_s6] ss:$0 sm:$0xff] }
 0x10f   : > { %604 = vmatpush.msra.mxu0 %v585_v54 }
 0x110   : > { %v577_v3 = vmax.f32 %v576_v0, 0.0 }
 0x111   : > { %605 = vmatpush.msra.mxu0 %v584_v55 }
 0x113   : > { %606 = vmatpush.msra.mxu0 %v583_v58 }
 0x115   : > { %607 = vmatpush.msra.mxu0 %v582_v59 }
 0x117   : > { %608 = vmatpush.msra.mxu0 %v581_v62 }
 0x119   : > { %609 = vmatpush.msra.mxu0 %v580_v63 }
 0x11b   : > { %610 = vmatpush.msra.mxu0 %v579_v1 }
 0x11d   : > { %611 = vmatpush.msra.mxu0 %v578_v2 }
 0x11e   : > { %811 = vmatmul.msk.f32.vlgmr.msra.gmra.mxu0 %vm592_vm9, %v577_v3 }
 0x19b   : > { %v613_v5 = vpop.f32.mrf.mxu0 }
 0x19c   : > { %v614_v6 = vadd.f32 %v924_v4, %v613_v5 }
 0x19e   : > { %v616_v7 = vmul.f32 1.442695, %v614_v6 }
 0x1a0   : > { %925 = vpow2.f32 %v616_v7 }
 0x1a6   : > { %v926_v8 = vpop.eup %925 }
 0x1a7   : > { %619 = vrot.lane.b32.xlu0 %v926_v8, %s1192_s11 }
 0x1af   : > { %624 = vrot.lane.b32.xlu0 %v614_v6, %s1193_s15 }
 0x219   : > { %v620_v9 = vpop.permute.xlu0 %619 }
 0x21a   : > { %v622_v10 = vmul.f32 %v620_v9, %v614_v6 }
 0x221   : > { %v625_v11 = vpop.permute.xlu0 %624 }
 0x222   : > { %v627_v12 = vadd.f32 %v625_v11, %v622_v10 }
 0x224   : > { %629 = vst.msk [vmem:[#allocation16] sm:$0xff] %vm628_vm10, %v627_v12 }
 0x225 PF: > { %p881_p13 = scmp.eq.s32.totalorder %s1251_s27, 1  ;;  %s646_s20 = sshll.u32 %s1363_s7, 4  ;;  %s647_s20 = int_to_ptr.hbm [resolvable:$true] %s646_s20 }
 0x226   : > { %s1194_s21 = smov [#allocation16]  }
 0x227   : > { %s644_s22 = sshll.u32 %s1194_s21, 4  ;;  %s645_s22 = int_to_ptr.vmem [resolvable:$true] %s644_s22 }
 0x228   : > { %841 = dma.vmem_to_hbm [thread:$0]  (%p881_p13), %s645_s22, 128, %s647_s20, [#allocation7]  }
 0x229 PF: > { %p883_p0 = scmp.eq.s32.totalorder %s791_s28, 1 }
 0x22b   : > { %p865_p1 = pnand %p883_p0, %p797_p7 }
 0x22d   : > { %p866_p2 = pneg %p865_p1 }
 0x22f   : > { %1168 = dma.done.wait (%p866_p2), [#allocation7], 128  }
 0x230   : > { %1170 = vsyncadd (%p866_p2), [#allocation7], 4294967168  ;;  %s28_s26 = sadd.s32 1, %s1181_s26   ;;  %s1366_s24 = smov %s1177_s25 }
 0x231   : > { %p25_p3 = scmp.ge.s32.totalorder %s28_s26, 4   ;;  %s1367_s25 = smov %s1369_s29 }
 0x233   :  { %27 = sbr.rel (!%p25_p3) target bundleno = 9 (0x9), region = 141 }
 0x238   :  { %665 = vsyncpa [#allocation6], 1 }
 0x239   :  { %667 = vsyncpa [#allocation6 + $0x1], 1 }
 0x23a   :  { %668 = vsyncpa [#allocation9], 1 }
 0x23b   :  { %670 = vsyncpa [#allocation9 + $0x1], 1 }
 0x23c   :  { %671 = vsyncpa [#allocation12], 1 }
 0x23d   :  { %672 = vsyncpa [#allocation15], 1 }
 0x23e   :  { %673 = vsyncpa [#allocation7], 1 }
 0x23f   :  { %675 = vsyncpa [#allocation7 + $0x1], 1 }

</bundles_post_ra>
